<compile_context>
chip_gen: v5e
topology: v5e:2x2
jax: 0.10.0
libtpu: 0.0.40
codegen_flags: <defaults>
</compile_context>

<pallas_src>
import functools

import numpy as np
import jax
import jax.numpy as jnp
from jax.experimental import pallas as pl
from jax.experimental.pallas import tpu as pltpu


def pgc_kernel(params_ref, idx_ref, o_ref, *, d, m, part_bits):
    """Per-batch-tile work: state-prob gather, L build, per-lane logdet GE.

    Layout: batch as (sub-block, sublane, lane); each per-batch value is one
    full [8, 128] f32 vreg.
      params_ref : SMEM f32 [d*m + d*d + 1] = (w_full | L0 | alpha), batch-invariant
      idx_ref    : VMEM i32 [units, 8, 128]  packed state indices (all d parts / elem)
      o_ref      : VMEM f32 [units, 8, 128]  logdet(L_b) - logdet(L0 + I)
    """
    w_off = 0
    l0_off = d * m
    a_off = d * m + d * d

    # Batch-invariant SMEM scalars, hoisted out of the sub-block loop.
    w_scal = [[params_ref[w_off + i * m + k] for k in range(m)] for i in range(d)]
    l0_scal = [[params_ref[l0_off + i * d + j] for j in range(d)] for i in range(d)]
    alpha = params_ref[a_off]

    n_sub = idx_ref.shape[0]
    for s in range(n_sub):            # static unrolled loop over [8,128] sub-blocks
        code = idx_ref[s]             # [8, 128] int32: d packed state indices
        zero = jnp.zeros(code.shape, jnp.float32)

        # p[i] = w_full[i, state_i] via unrolled compare/select; state 0 stays
        # *exactly* 0.0 (required by the p == 0 diagonal fix below).
        p = []
        for i in range(d):
            st = jnp.bitwise_and(jnp.right_shift(code, i * part_bits), m - 1)
            pi = zero
            for k in range(1, m):
                pi = jnp.where(st == k, w_scal[i][k], pi)
            p.append(pi)

        # L kept as d*d independent [8,128] values (no concat -> no sublane
        # packing / re-slicing); diagonal forced to 1 where p[j] == 0.
        L = [[l0_scal[i][j] * p[j] for j in range(d)] for i in range(d)]
        for j in range(d):
            L[j][j] = jnp.where(p[j] == 0.0, jnp.float32(1.0), L[j][j])

        # Per-lane unpivoted Gaussian elimination.  Only the trailing
        # (d-kk-1)x(d-kk-1) sub-block is updated (cols <= kk never read again).
        prod = None
        for kk in range(d):
            piv = jnp.maximum(L[kk][kk], jnp.float32(1e-30))   # guard log(0)/div0
            prod = piv if prod is None else prod * piv
            inv = pl.reciprocal(piv, approx=True)              # EUP slot
            inv = inv * (2.0 - piv * inv)                      # one Newton step
            for i in range(kk + 1, d):
                mult = L[i][kk] * inv
                for j in range(kk + 1, d):
                    L[i][j] = L[i][j] - mult * L[kk][j]

        # Single log of the pivot product (1 EUP op per sub-block instead of d).
        o_ref[s] = jnp.log(prod) - alpha


def nonsym_simple_pgc(x, part_idx, W, A, B, C, *, batch_tile=4096):
    """NonSymSimplePGC.forward: glue + batch-invariant parameter math in JAX,
    all per-batch work in a single gridded Pallas kernel."""
    batch = x.shape[0]
    d, p_sz = part_idx.shape
    m = 1 << p_sz

    # --- glue: pack all d state indices (p_sz bits each) into one int32/element ---
    bits = x[:, part_idx].astype(jnp.int32)                               # [B, d, p_sz]
    shifts = (jnp.arange(d, dtype=jnp.int32)[:, None] * p_sz
              + jnp.arange(p_sz, dtype=jnp.int32)[None, :])               # [d, p_sz]
    code = jnp.sum(jnp.left_shift(bits, shifts[None]), axis=(1, 2)).astype(jnp.int32)

    # --- batch tiling: full [8,128] vregs; keep >=2 grid steps when possible (v7x) ---
    SUB = 8 * 128                                    # one f32 vreg of batch elements
    units = -(-batch // SUB)                         # ceil
    max_units = max(1, batch_tile // SUB)
    tile_units = max(1, min(max_units, units // 2)) if units >= 2 else 1
    grid_n = -(-units // tile_units)
    bp = grid_n * tile_units * SUB
    if bp != batch:
        # padded elements get code 0 -> p 0 -> L = I -> logdet 0 (discarded below)
        code = jnp.pad(code, (0, bp - batch))
    code3 = code.reshape(bp // SUB, 8, 128)

    # --- batch-invariant parameter math (hoisted out of the per-batch path) ---
    w = jax.nn.softmax(W.astype(jnp.float32), axis=-1)
    w_full = jnp.concatenate([jnp.zeros((d, 1), jnp.float32), w], axis=1)  # slot 0 exact 0
    eye = jnp.eye(d, dtype=jnp.float32)
    L0 = A.T @ A + B @ C.T - C @ B.T + jnp.float32(1e-8) * eye
    _, alpha = jnp.linalg.slogdet(L0 + eye)
    params = jnp.concatenate(
        [w_full.reshape(-1), L0.reshape(-1), alpha.reshape(1).astype(jnp.float32)]
    )

    # Rough cost hint: gather + L build + GE per element, a few EUP ops / element.
    flops_per_elem = 2 * d * (m - 1) + 2 * d + 3 * d * d + 10 * d
    cost = pl.CostEstimate(
        flops=flops_per_elem * bp,
        transcendentals=(d + 1) * bp,
        bytes_accessed=8 * bp + 4 * int(params.shape[0]),
    )

    out = pl.pallas_call(
        functools.partial(pgc_kernel, d=d, m=m, part_bits=p_sz),
        out_shape=jax.ShapeDtypeStruct((bp // SUB, 8, 128), jnp.float32),
        grid=(grid_n,),
        in_specs=[
            pl.BlockSpec(memory_space=pltpu.MemorySpace.SMEM),            # params table
            pl.BlockSpec((tile_units, 8, 128), lambda i: (i, 0, 0)),      # packed idx tile
        ],
        out_specs=pl.BlockSpec((tile_units, 8, 128), lambda i: (i, 0, 0)),  # dense output
        compiler_params=pltpu.CompilerParams(
            dimension_semantics=("parallel",)),
        cost_estimate=cost,
    )(params, code3)
    return out.reshape(-1)[:batch]


if __name__ == "__main__":
    key = jax.random.PRNGKey(0)

    # Module configuration (consistent with NonSymSimplePGC(n, partition)).
    n = 8
    partition = [[0, 1], [2, 3], [4, 5], [6, 7]]
    dpp_size = len(partition)
    part_size = 2
    m = 1 << part_size
    batch = 5000        # non-multiple of 1024: exercises padding, grid > 1, inner loop > 1

    k1, k2, k3, k4, k5 = jax.random.split(key, 5)
    x = jax.random.bernoulli(k1, 0.5, (batch, n)).astype(jnp.int32)

    # Deterministic parameter init (matches __init__ shapes: randn + column norm).
    A = jax.random.normal(k2, (dpp_size, dpp_size), jnp.float32)
    B = jax.random.normal(k3, (dpp_size, dpp_size), jnp.float32)
    C = jax.random.normal(k4, (dpp_size, dpp_size), jnp.float32)
    A = A / jnp.linalg.norm(A, axis=0, keepdims=True)
    B = B / jnp.linalg.norm(B, axis=0, keepdims=True)
    C = C / jnp.linalg.norm(C, axis=0, keepdims=True)
    W = jax.random.normal(k5, (dpp_size, m - 1), jnp.float32)   # Simple.W per part

    part_idx = jnp.asarray(np.array(partition, dtype=np.int32))

    y = nonsym_simple_pgc(x, part_idx, W, A, B, C, batch_tile=4096)
    y = jax.block_until_ready(y)

    # Pure-JAX reference for correctness.
    def reference(x):
        pow2 = jnp.left_shift(1, jnp.arange(part_size, dtype=jnp.int32))
        idx = jnp.sum(x[:, part_idx] * pow2[None, None, :], axis=-1)        # [batch, dpp]
        w = jax.nn.softmax(W, axis=-1)
        w_full = jnp.concatenate([jnp.zeros((dpp_size, 1), jnp.float32), w], axis=1)
        p = w_full[jnp.arange(dpp_size)[None, :], idx]                      # [batch, dpp]
        I = jnp.eye(dpp_size, dtype=jnp.float32)
        L0 = A.T @ A + B @ C.T - C @ B.T + 1e-8 * I
        L = L0[None] * p[:, None, :]
        diag_fix = (I[None] == 1.0) & (p[:, None, :] == 0.0)
        L = jnp.where(diag_fix, 1.0, L)
        _, logabs = jnp.linalg.slogdet(L)      # det > 0, matches torch.logdet
        _, alpha = jnp.linalg.slogdet(L0 + I)
        return logabs - alpha

    y_ref = jax.block_until_ready(reference(x))
    assert np.allclose(np.asarray(y), np.asarray(y_ref), rtol=1e-3, atol=1e-3), (y, y_ref)
    print("KERNEL_OK")
</pallas_src>

<mosaic_0001>
module attributes {stable_mosaic.version = 11 : i64} {
  func.func @pgc_kernel(%arg0: i32, %arg1: memref<33xf32, #tpu.memory_space<smem>>, %arg2: memref<2x8x128xi32, #tpu.memory_space<vmem>>, %arg3: memref<2x8x128xf32, #tpu.memory_space<vmem>>) attributes {dimension_semantics = [#tpu.dimension_semantics<parallel>], iteration_bounds = array<i64: 3>, scalar_prefetch = 0 : i64, scratch_operands = 0 : i64, tpu.core_type = #tpu.core_type<tc>, window_params = [{transform_indices = @transform_0, window_bounds = array<i64: 33>}, {transform_indices = @transform_1, window_bounds = array<i64: 2, 8, 128>}, {transform_indices = @transform_2, window_bounds = array<i64: 2, 8, 128>}]} {
    %c1 = arith.constant 1 : index
    %0 = memref.load %arg1[%c1] : memref<33xf32, #tpu.memory_space<smem>>
    %c2 = arith.constant 2 : index
    %1 = memref.load %arg1[%c2] : memref<33xf32, #tpu.memory_space<smem>>
    %c3 = arith.constant 3 : index
    %2 = memref.load %arg1[%c3] : memref<33xf32, #tpu.memory_space<smem>>
    %c5 = arith.constant 5 : index
    %3 = memref.load %arg1[%c5] : memref<33xf32, #tpu.memory_space<smem>>
    %c6 = arith.constant 6 : index
    %4 = memref.load %arg1[%c6] : memref<33xf32, #tpu.memory_space<smem>>
    %c7 = arith.constant 7 : index
    %5 = memref.load %arg1[%c7] : memref<33xf32, #tpu.memory_space<smem>>
    %c9 = arith.constant 9 : index
    %6 = memref.load %arg1[%c9] : memref<33xf32, #tpu.memory_space<smem>>
    %c10 = arith.constant 10 : index
    %7 = memref.load %arg1[%c10] : memref<33xf32, #tpu.memory_space<smem>>
    %c11 = arith.constant 11 : index
    %8 = memref.load %arg1[%c11] : memref<33xf32, #tpu.memory_space<smem>>
    %c13 = arith.constant 13 : index
    %9 = memref.load %arg1[%c13] : memref<33xf32, #tpu.memory_space<smem>>
    %c14 = arith.constant 14 : index
    %10 = memref.load %arg1[%c14] : memref<33xf32, #tpu.memory_space<smem>>
    %c15 = arith.constant 15 : index
    %11 = memref.load %arg1[%c15] : memref<33xf32, #tpu.memory_space<smem>>
    %c16 = arith.constant 16 : index
    %12 = memref.load %arg1[%c16] : memref<33xf32, #tpu.memory_space<smem>>
    %c17 = arith.constant 17 : index
    %13 = memref.load %arg1[%c17] : memref<33xf32, #tpu.memory_space<smem>>
    %c18 = arith.constant 18 : index
    %14 = memref.load %arg1[%c18] : memref<33xf32, #tpu.memory_space<smem>>
    %c19 = arith.constant 19 : index
    %15 = memref.load %arg1[%c19] : memref<33xf32, #tpu.memory_space<smem>>
    %c20 = arith.constant 20 : index
    %16 = memref.load %arg1[%c20] : memref<33xf32, #tpu.memory_space<smem>>
    %c21 = arith.constant 21 : index
    %17 = memref.load %arg1[%c21] : memref<33xf32, #tpu.memory_space<smem>>
    %c22 = arith.constant 22 : index
    %18 = memref.load %arg1[%c22] : memref<33xf32, #tpu.memory_space<smem>>
    %c23 = arith.constant 23 : index
    %19 = memref.load %arg1[%c23] : memref<33xf32, #tpu.memory_space<smem>>
    %c24 = arith.constant 24 : index
    %20 = memref.load %arg1[%c24] : memref<33xf32, #tpu.memory_space<smem>>
    %c25 = arith.constant 25 : index
    %21 = memref.load %arg1[%c25] : memref<33xf32, #tpu.memory_space<smem>>
    %c26 = arith.constant 26 : index
    %22 = memref.load %arg1[%c26] : memref<33xf32, #tpu.memory_space<smem>>
    %c27 = arith.constant 27 : index
    %23 = memref.load %arg1[%c27] : memref<33xf32, #tpu.memory_space<smem>>
    %c28 = arith.constant 28 : index
    %24 = memref.load %arg1[%c28] : memref<33xf32, #tpu.memory_space<smem>>
    %c29 = arith.constant 29 : index
    %25 = memref.load %arg1[%c29] : memref<33xf32, #tpu.memory_space<smem>>
    %c30 = arith.constant 30 : index
    %26 = memref.load %arg1[%c30] : memref<33xf32, #tpu.memory_space<smem>>
    %c31 = arith.constant 31 : index
    %27 = memref.load %arg1[%c31] : memref<33xf32, #tpu.memory_space<smem>>
    %c32 = arith.constant 32 : index
    %28 = memref.load %arg1[%c32] : memref<33xf32, #tpu.memory_space<smem>>
    %c0 = arith.constant 0 : index
    %c0_0 = arith.constant 0 : index
    %c0_1 = arith.constant 0 : index
    %29 = vector.load %arg2[%c0, %c0_0, %c0_1] : memref<2x8x128xi32, #tpu.memory_space<vmem>>, vector<1x8x128xi32>
    %30 = vector.shape_cast %29 : vector<1x8x128xi32> to vector<8x128xi32>
    %cst = arith.constant 0.000000e+00 : f32
    %31 = vector.broadcast %cst : f32 to vector<8x128xf32>
    %c0_i32 = arith.constant 0 : i32
    %32 = vector.broadcast %c0_i32 : i32 to vector<8x128xi32>
    %33 = arith.shrsi %30, %32 : vector<8x128xi32>
    %c3_i32 = arith.constant 3 : i32
    %34 = vector.broadcast %c3_i32 : i32 to vector<8x128xi32>
    %35 = arith.andi %33, %34 : vector<8x128xi32>
    %c1_i32 = arith.constant 1 : i32
    %36 = vector.broadcast %c1_i32 : i32 to vector<8x128xi32>
    %37 = arith.cmpi eq, %35, %36 : vector<8x128xi32>
    %38 = vector.broadcast %0 : f32 to vector<8x128xf32>
    %39 = arith.select %37, %38, %31 : vector<8x128xi1>, vector<8x128xf32>
    %c2_i32 = arith.constant 2 : i32
    %40 = vector.broadcast %c2_i32 : i32 to vector<8x128xi32>
    %41 = arith.cmpi eq, %35, %40 : vector<8x128xi32>
    %42 = vector.broadcast %1 : f32 to vector<8x128xf32>
    %43 = arith.select %41, %42, %39 : vector<8x128xi1>, vector<8x128xf32>
    %c3_i32_2 = arith.constant 3 : i32
    %44 = vector.broadcast %c3_i32_2 : i32 to vector<8x128xi32>
    %45 = arith.cmpi eq, %35, %44 : vector<8x128xi32>
    %46 = vector.broadcast %2 : f32 to vector<8x128xf32>
    %47 = arith.select %45, %46, %43 : vector<8x128xi1>, vector<8x128xf32>
    %c2_i32_3 = arith.constant 2 : i32
    %48 = vector.broadcast %c2_i32_3 : i32 to vector<8x128xi32>
    %49 = arith.shrsi %30, %48 : vector<8x128xi32>
    %c3_i32_4 = arith.constant 3 : i32
    %50 = vector.broadcast %c3_i32_4 : i32 to vector<8x128xi32>
    %51 = arith.andi %49, %50 : vector<8x128xi32>
    %c1_i32_5 = arith.constant 1 : i32
    %52 = vector.broadcast %c1_i32_5 : i32 to vector<8x128xi32>
    %53 = arith.cmpi eq, %51, %52 : vector<8x128xi32>
    %54 = vector.broadcast %3 : f32 to vector<8x128xf32>
    %55 = arith.select %53, %54, %31 : vector<8x128xi1>, vector<8x128xf32>
    %c2_i32_6 = arith.constant 2 : i32
    %56 = vector.broadcast %c2_i32_6 : i32 to vector<8x128xi32>
    %57 = arith.cmpi eq, %51, %56 : vector<8x128xi32>
    %58 = vector.broadcast %4 : f32 to vector<8x128xf32>
    %59 = arith.select %57, %58, %55 : vector<8x128xi1>, vector<8x128xf32>
    %c3_i32_7 = arith.constant 3 : i32
    %60 = vector.broadcast %c3_i32_7 : i32 to vector<8x128xi32>
    %61 = arith.cmpi eq, %51, %60 : vector<8x128xi32>
    %62 = vector.broadcast %5 : f32 to vector<8x128xf32>
    %63 = arith.select %61, %62, %59 : vector<8x128xi1>, vector<8x128xf32>
    %c4_i32 = arith.constant 4 : i32
    %64 = vector.broadcast %c4_i32 : i32 to vector<8x128xi32>
    %65 = arith.shrsi %30, %64 : vector<8x128xi32>
    %c3_i32_8 = arith.constant 3 : i32
    %66 = vector.broadcast %c3_i32_8 : i32 to vector<8x128xi32>
    %67 = arith.andi %65, %66 : vector<8x128xi32>
    %c1_i32_9 = arith.constant 1 : i32
    %68 = vector.broadcast %c1_i32_9 : i32 to vector<8x128xi32>
    %69 = arith.cmpi eq, %67, %68 : vector<8x128xi32>
    %70 = vector.broadcast %6 : f32 to vector<8x128xf32>
    %71 = arith.select %69, %70, %31 : vector<8x128xi1>, vector<8x128xf32>
    %c2_i32_10 = arith.constant 2 : i32
    %72 = vector.broadcast %c2_i32_10 : i32 to vector<8x128xi32>
    %73 = arith.cmpi eq, %67, %72 : vector<8x128xi32>
    %74 = vector.broadcast %7 : f32 to vector<8x128xf32>
    %75 = arith.select %73, %74, %71 : vector<8x128xi1>, vector<8x128xf32>
    %c3_i32_11 = arith.constant 3 : i32
    %76 = vector.broadcast %c3_i32_11 : i32 to vector<8x128xi32>
    %77 = arith.cmpi eq, %67, %76 : vector<8x128xi32>
    %78 = vector.broadcast %8 : f32 to vector<8x128xf32>
    %79 = arith.select %77, %78, %75 : vector<8x128xi1>, vector<8x128xf32>
    %c6_i32 = arith.constant 6 : i32
    %80 = vector.broadcast %c6_i32 : i32 to vector<8x128xi32>
    %81 = arith.shrsi %30, %80 : vector<8x128xi32>
    %c3_i32_12 = arith.constant 3 : i32
    %82 = vector.broadcast %c3_i32_12 : i32 to vector<8x128xi32>
    %83 = arith.andi %81, %82 : vector<8x128xi32>
    %c1_i32_13 = arith.constant 1 : i32
    %84 = vector.broadcast %c1_i32_13 : i32 to vector<8x128xi32>
    %85 = arith.cmpi eq, %83, %84 : vector<8x128xi32>
    %86 = vector.broadcast %9 : f32 to vector<8x128xf32>
    %87 = arith.select %85, %86, %31 : vector<8x128xi1>, vector<8x128xf32>
    %c2_i32_14 = arith.constant 2 : i32
    %88 = vector.broadcast %c2_i32_14 : i32 to vector<8x128xi32>
    %89 = arith.cmpi eq, %83, %88 : vector<8x128xi32>
    %90 = vector.broadcast %10 : f32 to vector<8x128xf32>
    %91 = arith.select %89, %90, %87 : vector<8x128xi1>, vector<8x128xf32>
    %c3_i32_15 = arith.constant 3 : i32
    %92 = vector.broadcast %c3_i32_15 : i32 to vector<8x128xi32>
    %93 = arith.cmpi eq, %83, %92 : vector<8x128xi32>
    %94 = vector.broadcast %11 : f32 to vector<8x128xf32>
    %95 = arith.select %93, %94, %91 : vector<8x128xi1>, vector<8x128xf32>
    %96 = vector.broadcast %12 : f32 to vector<8x128xf32>
    %97 = arith.mulf %96, %47 : vector<8x128xf32>
    %98 = vector.broadcast %13 : f32 to vector<8x128xf32>
    %99 = arith.mulf %98, %63 : vector<8x128xf32>
    %100 = vector.broadcast %14 : f32 to vector<8x128xf32>
    %101 = arith.mulf %100, %79 : vector<8x128xf32>
    %102 = vector.broadcast %15 : f32 to vector<8x128xf32>
    %103 = arith.mulf %102, %95 : vector<8x128xf32>
    %104 = vector.broadcast %16 : f32 to vector<8x128xf32>
    %105 = arith.mulf %104, %47 : vector<8x128xf32>
    %106 = vector.broadcast %17 : f32 to vector<8x128xf32>
    %107 = arith.mulf %106, %63 : vector<8x128xf32>
    %108 = vector.broadcast %18 : f32 to vector<8x128xf32>
    %109 = arith.mulf %108, %79 : vector<8x128xf32>
    %110 = vector.broadcast %19 : f32 to vector<8x128xf32>
    %111 = arith.mulf %110, %95 : vector<8x128xf32>
    %112 = vector.broadcast %20 : f32 to vector<8x128xf32>
    %113 = arith.mulf %112, %47 : vector<8x128xf32>
    %114 = vector.broadcast %21 : f32 to vector<8x128xf32>
    %115 = arith.mulf %114, %63 : vector<8x128xf32>
    %116 = vector.broadcast %22 : f32 to vector<8x128xf32>
    %117 = arith.mulf %116, %79 : vector<8x128xf32>
    %118 = vector.broadcast %23 : f32 to vector<8x128xf32>
    %119 = arith.mulf %118, %95 : vector<8x128xf32>
    %120 = vector.broadcast %24 : f32 to vector<8x128xf32>
    %121 = arith.mulf %120, %47 : vector<8x128xf32>
    %122 = vector.broadcast %25 : f32 to vector<8x128xf32>
    %123 = arith.mulf %122, %63 : vector<8x128xf32>
    %124 = vector.broadcast %26 : f32 to vector<8x128xf32>
    %125 = arith.mulf %124, %79 : vector<8x128xf32>
    %126 = vector.broadcast %27 : f32 to vector<8x128xf32>
    %127 = arith.mulf %126, %95 : vector<8x128xf32>
    %cst_16 = arith.constant 0.000000e+00 : f32
    %128 = vector.broadcast %cst_16 : f32 to vector<8x128xf32>
    %129 = arith.cmpf oeq, %47, %128 : vector<8x128xf32>
    %cst_17 = arith.constant 1.000000e+00 : f32
    %130 = vector.broadcast %cst_17 : f32 to vector<8x128xf32>
    %131 = arith.select %129, %130, %97 : vector<8x128xi1>, vector<8x128xf32>
    %cst_18 = arith.constant 0.000000e+00 : f32
    %132 = vector.broadcast %cst_18 : f32 to vector<8x128xf32>
    %133 = arith.cmpf oeq, %63, %132 : vector<8x128xf32>
    %cst_19 = arith.constant 1.000000e+00 : f32
    %134 = vector.broadcast %cst_19 : f32 to vector<8x128xf32>
    %135 = arith.select %133, %134, %107 : vector<8x128xi1>, vector<8x128xf32>
    %cst_20 = arith.constant 0.000000e+00 : f32
    %136 = vector.broadcast %cst_20 : f32 to vector<8x128xf32>
    %137 = arith.cmpf oeq, %79, %136 : vector<8x128xf32>
    %cst_21 = arith.constant 1.000000e+00 : f32
    %138 = vector.broadcast %cst_21 : f32 to vector<8x128xf32>
    %139 = arith.select %137, %138, %117 : vector<8x128xi1>, vector<8x128xf32>
    %cst_22 = arith.constant 0.000000e+00 : f32
    %140 = vector.broadcast %cst_22 : f32 to vector<8x128xf32>
    %141 = arith.cmpf oeq, %95, %140 : vector<8x128xf32>
    %cst_23 = arith.constant 1.000000e+00 : f32
    %142 = vector.broadcast %cst_23 : f32 to vector<8x128xf32>
    %143 = arith.select %141, %142, %127 : vector<8x128xi1>, vector<8x128xf32>
    %cst_24 = arith.constant 1.000000e-30 : f32
    %144 = vector.broadcast %cst_24 : f32 to vector<8x128xf32>
    %145 = arith.maximumf %131, %144 : vector<8x128xf32>
    %146 = tpu.reciprocal %145 {approx = true} : vector<8x128xf32> -> vector<8x128xf32>
    %147 = arith.mulf %145, %146 : vector<8x128xf32>
    %cst_25 = arith.constant 2.000000e+00 : f32
    %148 = vector.broadcast %cst_25 : f32 to vector<8x128xf32>
    %149 = arith.subf %148, %147 : vector<8x128xf32>
    %150 = arith.mulf %146, %149 : vector<8x128xf32>
    %151 = arith.mulf %105, %150 : vector<8x128xf32>
    %152 = arith.mulf %151, %99 : vector<8x128xf32>
    %153 = arith.subf %135, %152 : vector<8x128xf32>
    %154 = arith.mulf %151, %101 : vector<8x128xf32>
    %155 = arith.subf %109, %154 : vector<8x128xf32>
    %156 = arith.mulf %151, %103 : vector<8x128xf32>
    %157 = arith.subf %111, %156 : vector<8x128xf32>
    %158 = arith.mulf %113, %150 : vector<8x128xf32>
    %159 = arith.mulf %158, %99 : vector<8x128xf32>
    %160 = arith.subf %115, %159 : vector<8x128xf32>
    %161 = arith.mulf %158, %101 : vector<8x128xf32>
    %162 = arith.subf %139, %161 : vector<8x128xf32>
    %163 = arith.mulf %158, %103 : vector<8x128xf32>
    %164 = arith.subf %119, %163 : vector<8x128xf32>
    %165 = arith.mulf %121, %150 : vector<8x128xf32>
    %166 = arith.mulf %165, %99 : vector<8x128xf32>
    %167 = arith.subf %123, %166 : vector<8x128xf32>
    %168 = arith.mulf %165, %101 : vector<8x128xf32>
    %169 = arith.subf %125, %168 : vector<8x128xf32>
    %170 = arith.mulf %165, %103 : vector<8x128xf32>
    %171 = arith.subf %143, %170 : vector<8x128xf32>
    %cst_26 = arith.constant 1.000000e-30 : f32
    %172 = vector.broadcast %cst_26 : f32 to vector<8x128xf32>
    %173 = arith.maximumf %153, %172 : vector<8x128xf32>
    %174 = arith.mulf %145, %173 : vector<8x128xf32>
    %175 = tpu.reciprocal %173 {approx = true} : vector<8x128xf32> -> vector<8x128xf32>
    %176 = arith.mulf %173, %175 : vector<8x128xf32>
    %cst_27 = arith.constant 2.000000e+00 : f32
    %177 = vector.broadcast %cst_27 : f32 to vector<8x128xf32>
    %178 = arith.subf %177, %176 : vector<8x128xf32>
    %179 = arith.mulf %175, %178 : vector<8x128xf32>
    %180 = arith.mulf %160, %179 : vector<8x128xf32>
    %181 = arith.mulf %180, %155 : vector<8x128xf32>
    %182 = arith.subf %162, %181 : vector<8x128xf32>
    %183 = arith.mulf %180, %157 : vector<8x128xf32>
    %184 = arith.subf %164, %183 : vector<8x128xf32>
    %185 = arith.mulf %167, %179 : vector<8x128xf32>
    %186 = arith.mulf %185, %155 : vector<8x128xf32>
    %187 = arith.subf %169, %186 : vector<8x128xf32>
    %188 = arith.mulf %185, %157 : vector<8x128xf32>
    %189 = arith.subf %171, %188 : vector<8x128xf32>
    %cst_28 = arith.constant 1.000000e-30 : f32
    %190 = vector.broadcast %cst_28 : f32 to vector<8x128xf32>
    %191 = arith.maximumf %182, %190 : vector<8x128xf32>
    %192 = arith.mulf %174, %191 : vector<8x128xf32>
    %193 = tpu.reciprocal %191 {approx = true} : vector<8x128xf32> -> vector<8x128xf32>
    %194 = arith.mulf %191, %193 : vector<8x128xf32>
    %cst_29 = arith.constant 2.000000e+00 : f32
    %195 = vector.broadcast %cst_29 : f32 to vector<8x128xf32>
    %196 = arith.subf %195, %194 : vector<8x128xf32>
    %197 = arith.mulf %193, %196 : vector<8x128xf32>
    %198 = arith.mulf %187, %197 : vector<8x128xf32>
    %199 = arith.mulf %198, %184 : vector<8x128xf32>
    %200 = arith.subf %189, %199 : vector<8x128xf32>
    %cst_30 = arith.constant 1.000000e-30 : f32
    %201 = vector.broadcast %cst_30 : f32 to vector<8x128xf32>
    %202 = arith.maximumf %200, %201 : vector<8x128xf32>
    %203 = arith.mulf %192, %202 : vector<8x128xf32>
    %204 = math.log %203 : vector<8x128xf32>
    %205 = vector.broadcast %28 : f32 to vector<8x128xf32>
    %206 = arith.subf %204, %205 : vector<8x128xf32>
    %c0_31 = arith.constant 0 : index
    %c0_32 = arith.constant 0 : index
    %c0_33 = arith.constant 0 : index
    %207 = vector.load %arg3[%c0_31, %c0_32, %c0_33] : memref<2x8x128xf32, #tpu.memory_space<vmem>>, vector<1x8x128xf32>
    %208 = vector.shape_cast %207 : vector<1x8x128xf32> to vector<8x128xf32>
    %209 = vector.shape_cast %206 : vector<8x128xf32> to vector<1x8x128xf32>
    tpu.vector_store %arg3[%c0_31, %c0_32, %c0_33], %209 {strides = array<i32>} : memref<2x8x128xf32, #tpu.memory_space<vmem>>, vector<1x8x128xf32>,
    %c1_34 = arith.constant 1 : index
    %c0_35 = arith.constant 0 : index
    %c0_36 = arith.constant 0 : index
    %210 = vector.load %arg2[%c1_34, %c0_35, %c0_36] : memref<2x8x128xi32, #tpu.memory_space<vmem>>, vector<1x8x128xi32>
    %211 = vector.shape_cast %210 : vector<1x8x128xi32> to vector<8x128xi32>
    %cst_37 = arith.constant 0.000000e+00 : f32
    %212 = vector.broadcast %cst_37 : f32 to vector<8x128xf32>
    %c0_i32_38 = arith.constant 0 : i32
    %213 = vector.broadcast %c0_i32_38 : i32 to vector<8x128xi32>
    %214 = arith.shrsi %211, %213 : vector<8x128xi32>
    %c3_i32_39 = arith.constant 3 : i32
    %215 = vector.broadcast %c3_i32_39 : i32 to vector<8x128xi32>
    %216 = arith.andi %214, %215 : vector<8x128xi32>
    %c1_i32_40 = arith.constant 1 : i32
    %217 = vector.broadcast %c1_i32_40 : i32 to vector<8x128xi32>
    %218 = arith.cmpi eq, %216, %217 : vector<8x128xi32>
    %219 = vector.broadcast %0 : f32 to vector<8x128xf32>
    %220 = arith.select %218, %219, %212 : vector<8x128xi1>, vector<8x128xf32>
    %c2_i32_41 = arith.constant 2 : i32
    %221 = vector.broadcast %c2_i32_41 : i32 to vector<8x128xi32>
    %222 = arith.cmpi eq, %216, %221 : vector<8x128xi32>
    %223 = vector.broadcast %1 : f32 to vector<8x128xf32>
    %224 = arith.select %222, %223, %220 : vector<8x128xi1>, vector<8x128xf32>
    %c3_i32_42 = arith.constant 3 : i32
    %225 = vector.broadcast %c3_i32_42 : i32 to vector<8x128xi32>
    %226 = arith.cmpi eq, %216, %225 : vector<8x128xi32>
    %227 = vector.broadcast %2 : f32 to vector<8x128xf32>
    %228 = arith.select %226, %227, %224 : vector<8x128xi1>, vector<8x128xf32>
    %c2_i32_43 = arith.constant 2 : i32
    %229 = vector.broadcast %c2_i32_43 : i32 to vector<8x128xi32>
    %230 = arith.shrsi %211, %229 : vector<8x128xi32>
    %c3_i32_44 = arith.constant 3 : i32
    %231 = vector.broadcast %c3_i32_44 : i32 to vector<8x128xi32>
    %232 = arith.andi %230, %231 : vector<8x128xi32>
    %c1_i32_45 = arith.constant 1 : i32
    %233 = vector.broadcast %c1_i32_45 : i32 to vector<8x128xi32>
    %234 = arith.cmpi eq, %232, %233 : vector<8x128xi32>
    %235 = vector.broadcast %3 : f32 to vector<8x128xf32>
    %236 = arith.select %234, %235, %212 : vector<8x128xi1>, vector<8x128xf32>
    %c2_i32_46 = arith.constant 2 : i32
    %237 = vector.broadcast %c2_i32_46 : i32 to vector<8x128xi32>
    %238 = arith.cmpi eq, %232, %237 : vector<8x128xi32>
    %239 = vector.broadcast %4 : f32 to vector<8x128xf32>
    %240 = arith.select %238, %239, %236 : vector<8x128xi1>, vector<8x128xf32>
    %c3_i32_47 = arith.constant 3 : i32
    %241 = vector.broadcast %c3_i32_47 : i32 to vector<8x128xi32>
    %242 = arith.cmpi eq, %232, %241 : vector<8x128xi32>
    %243 = vector.broadcast %5 : f32 to vector<8x128xf32>
    %244 = arith.select %242, %243, %240 : vector<8x128xi1>, vector<8x128xf32>
    %c4_i32_48 = arith.constant 4 : i32
    %245 = vector.broadcast %c4_i32_48 : i32 to vector<8x128xi32>
    %246 = arith.shrsi %211, %245 : vector<8x128xi32>
    %c3_i32_49 = arith.constant 3 : i32
    %247 = vector.broadcast %c3_i32_49 : i32 to vector<8x128xi32>
    %248 = arith.andi %246, %247 : vector<8x128xi32>
    %c1_i32_50 = arith.constant 1 : i32
    %249 = vector.broadcast %c1_i32_50 : i32 to vector<8x128xi32>
    %250 = arith.cmpi eq, %248, %249 : vector<8x128xi32>
    %251 = vector.broadcast %6 : f32 to vector<8x128xf32>
    %252 = arith.select %250, %251, %212 : vector<8x128xi1>, vector<8x128xf32>
    %c2_i32_51 = arith.constant 2 : i32
    %253 = vector.broadcast %c2_i32_51 : i32 to vector<8x128xi32>
    %254 = arith.cmpi eq, %248, %253 : vector<8x128xi32>
    %255 = vector.broadcast %7 : f32 to vector<8x128xf32>
    %256 = arith.select %254, %255, %252 : vector<8x128xi1>, vector<8x128xf32>
    %c3_i32_52 = arith.constant 3 : i32
    %257 = vector.broadcast %c3_i32_52 : i32 to vector<8x128xi32>
    %258 = arith.cmpi eq, %248, %257 : vector<8x128xi32>
    %259 = vector.broadcast %8 : f32 to vector<8x128xf32>
    %260 = arith.select %258, %259, %256 : vector<8x128xi1>, vector<8x128xf32>
    %c6_i32_53 = arith.constant 6 : i32
    %261 = vector.broadcast %c6_i32_53 : i32 to vector<8x128xi32>
    %262 = arith.shrsi %211, %261 : vector<8x128xi32>
    %c3_i32_54 = arith.constant 3 : i32
    %263 = vector.broadcast %c3_i32_54 : i32 to vector<8x128xi32>
    %264 = arith.andi %262, %263 : vector<8x128xi32>
    %c1_i32_55 = arith.constant 1 : i32
    %265 = vector.broadcast %c1_i32_55 : i32 to vector<8x128xi32>
    %266 = arith.cmpi eq, %264, %265 : vector<8x128xi32>
    %267 = vector.broadcast %9 : f32 to vector<8x128xf32>
    %268 = arith.select %266, %267, %212 : vector<8x128xi1>, vector<8x128xf32>
    %c2_i32_56 = arith.constant 2 : i32
    %269 = vector.broadcast %c2_i32_56 : i32 to vector<8x128xi32>
    %270 = arith.cmpi eq, %264, %269 : vector<8x128xi32>
    %271 = vector.broadcast %10 : f32 to vector<8x128xf32>
    %272 = arith.select %270, %271, %268 : vector<8x128xi1>, vector<8x128xf32>
    %c3_i32_57 = arith.constant 3 : i32
    %273 = vector.broadcast %c3_i32_57 : i32 to vector<8x128xi32>
    %274 = arith.cmpi eq, %264, %273 : vector<8x128xi32>
    %275 = vector.broadcast %11 : f32 to vector<8x128xf32>
    %276 = arith.select %274, %275, %272 : vector<8x128xi1>, vector<8x128xf32>
    %277 = vector.broadcast %12 : f32 to vector<8x128xf32>
    %278 = arith.mulf %277, %228 : vector<8x128xf32>
    %279 = vector.broadcast %13 : f32 to vector<8x128xf32>
    %280 = arith.mulf %279, %244 : vector<8x128xf32>
    %281 = vector.broadcast %14 : f32 to vector<8x128xf32>
    %282 = arith.mulf %281, %260 : vector<8x128xf32>
    %283 = vector.broadcast %15 : f32 to vector<8x128xf32>
    %284 = arith.mulf %283, %276 : vector<8x128xf32>
    %285 = vector.broadcast %16 : f32 to vector<8x128xf32>
    %286 = arith.mulf %285, %228 : vector<8x128xf32>
    %287 = vector.broadcast %17 : f32 to vector<8x128xf32>
    %288 = arith.mulf %287, %244 : vector<8x128xf32>
    %289 = vector.broadcast %18 : f32 to vector<8x128xf32>
    %290 = arith.mulf %289, %260 : vector<8x128xf32>
    %291 = vector.broadcast %19 : f32 to vector<8x128xf32>
    %292 = arith.mulf %291, %276 : vector<8x128xf32>
    %293 = vector.broadcast %20 : f32 to vector<8x128xf32>
    %294 = arith.mulf %293, %228 : vector<8x128xf32>
    %295 = vector.broadcast %21 : f32 to vector<8x128xf32>
    %296 = arith.mulf %295, %244 : vector<8x128xf32>
    %297 = vector.broadcast %22 : f32 to vector<8x128xf32>
    %298 = arith.mulf %297, %260 : vector<8x128xf32>
    %299 = vector.broadcast %23 : f32 to vector<8x128xf32>
    %300 = arith.mulf %299, %276 : vector<8x128xf32>
    %301 = vector.broadcast %24 : f32 to vector<8x128xf32>
    %302 = arith.mulf %301, %228 : vector<8x128xf32>
    %303 = vector.broadcast %25 : f32 to vector<8x128xf32>
    %304 = arith.mulf %303, %244 : vector<8x128xf32>
    %305 = vector.broadcast %26 : f32 to vector<8x128xf32>
    %306 = arith.mulf %305, %260 : vector<8x128xf32>
    %307 = vector.broadcast %27 : f32 to vector<8x128xf32>
    %308 = arith.mulf %307, %276 : vector<8x128xf32>
    %cst_58 = arith.constant 0.000000e+00 : f32
    %309 = vector.broadcast %cst_58 : f32 to vector<8x128xf32>
    %310 = arith.cmpf oeq, %228, %309 : vector<8x128xf32>
    %cst_59 = arith.constant 1.000000e+00 : f32
    %311 = vector.broadcast %cst_59 : f32 to vector<8x128xf32>
    %312 = arith.select %310, %311, %278 : vector<8x128xi1>, vector<8x128xf32>
    %cst_60 = arith.constant 0.000000e+00 : f32
    %313 = vector.broadcast %cst_60 : f32 to vector<8x128xf32>
    %314 = arith.cmpf oeq, %244, %313 : vector<8x128xf32>
    %cst_61 = arith.constant 1.000000e+00 : f32
    %315 = vector.broadcast %cst_61 : f32 to vector<8x128xf32>
    %316 = arith.select %314, %315, %288 : vector<8x128xi1>, vector<8x128xf32>
    %cst_62 = arith.constant 0.000000e+00 : f32
    %317 = vector.broadcast %cst_62 : f32 to vector<8x128xf32>
    %318 = arith.cmpf oeq, %260, %317 : vector<8x128xf32>
    %cst_63 = arith.constant 1.000000e+00 : f32
    %319 = vector.broadcast %cst_63 : f32 to vector<8x128xf32>
    %320 = arith.select %318, %319, %298 : vector<8x128xi1>, vector<8x128xf32>
    %cst_64 = arith.constant 0.000000e+00 : f32
    %321 = vector.broadcast %cst_64 : f32 to vector<8x128xf32>
    %322 = arith.cmpf oeq, %276, %321 : vector<8x128xf32>
    %cst_65 = arith.constant 1.000000e+00 : f32
    %323 = vector.broadcast %cst_65 : f32 to vector<8x128xf32>
    %324 = arith.select %322, %323, %308 : vector<8x128xi1>, vector<8x128xf32>
    %cst_66 = arith.constant 1.000000e-30 : f32
    %325 = vector.broadcast %cst_66 : f32 to vector<8x128xf32>
    %326 = arith.maximumf %312, %325 : vector<8x128xf32>
    %327 = tpu.reciprocal %326 {approx = true} : vector<8x128xf32> -> vector<8x128xf32>
    %328 = arith.mulf %326, %327 : vector<8x128xf32>
    %cst_67 = arith.constant 2.000000e+00 : f32
    %329 = vector.broadcast %cst_67 : f32 to vector<8x128xf32>
    %330 = arith.subf %329, %328 : vector<8x128xf32>
    %331 = arith.mulf %327, %330 : vector<8x128xf32>
    %332 = arith.mulf %286, %331 : vector<8x128xf32>
    %333 = arith.mulf %332, %280 : vector<8x128xf32>
    %334 = arith.subf %316, %333 : vector<8x128xf32>
    %335 = arith.mulf %332, %282 : vector<8x128xf32>
    %336 = arith.subf %290, %335 : vector<8x128xf32>
    %337 = arith.mulf %332, %284 : vector<8x128xf32>
    %338 = arith.subf %292, %337 : vector<8x128xf32>
    %339 = arith.mulf %294, %331 : vector<8x128xf32>
    %340 = arith.mulf %339, %280 : vector<8x128xf32>
    %341 = arith.subf %296, %340 : vector<8x128xf32>
    %342 = arith.mulf %339, %282 : vector<8x128xf32>
    %343 = arith.subf %320, %342 : vector<8x128xf32>
    %344 = arith.mulf %339, %284 : vector<8x128xf32>
    %345 = arith.subf %300, %344 : vector<8x128xf32>
    %346 = arith.mulf %302, %331 : vector<8x128xf32>
    %347 = arith.mulf %346, %280 : vector<8x128xf32>
    %348 = arith.subf %304, %347 : vector<8x128xf32>
    %349 = arith.mulf %346, %282 : vector<8x128xf32>
    %350 = arith.subf %306, %349 : vector<8x128xf32>
    %351 = arith.mulf %346, %284 : vector<8x128xf32>
    %352 = arith.subf %324, %351 : vector<8x128xf32>
    %cst_68 = arith.constant 1.000000e-30 : f32
    %353 = vector.broadcast %cst_68 : f32 to vector<8x128xf32>
    %354 = arith.maximumf %334, %353 : vector<8x128xf32>
    %355 = arith.mulf %326, %354 : vector<8x128xf32>
    %356 = tpu.reciprocal %354 {approx = true} : vector<8x128xf32> -> vector<8x128xf32>
    %357 = arith.mulf %354, %356 : vector<8x128xf32>
    %cst_69 = arith.constant 2.000000e+00 : f32
    %358 = vector.broadcast %cst_69 : f32 to vector<8x128xf32>
    %359 = arith.subf %358, %357 : vector<8x128xf32>
    %360 = arith.mulf %356, %359 : vector<8x128xf32>
    %361 = arith.mulf %341, %360 : vector<8x128xf32>
    %362 = arith.mulf %361, %336 : vector<8x128xf32>
    %363 = arith.subf %343, %362 : vector<8x128xf32>
    %364 = arith.mulf %361, %338 : vector<8x128xf32>
    %365 = arith.subf %345, %364 : vector<8x128xf32>
    %366 = arith.mulf %348, %360 : vector<8x128xf32>
    %367 = arith.mulf %366, %336 : vector<8x128xf32>
    %368 = arith.subf %350, %367 : vector<8x128xf32>
    %369 = arith.mulf %366, %338 : vector<8x128xf32>
    %370 = arith.subf %352, %369 : vector<8x128xf32>
    %cst_70 = arith.constant 1.000000e-30 : f32
    %371 = vector.broadcast %cst_70 : f32 to vector<8x128xf32>
    %372 = arith.maximumf %363, %371 : vector<8x128xf32>
    %373 = arith.mulf %355, %372 : vector<8x128xf32>
    %374 = tpu.reciprocal %372 {approx = true} : vector<8x128xf32> -> vector<8x128xf32>
    %375 = arith.mulf %372, %374 : vector<8x128xf32>
    %cst_71 = arith.constant 2.000000e+00 : f32
    %376 = vector.broadcast %cst_71 : f32 to vector<8x128xf32>
    %377 = arith.subf %376, %375 : vector<8x128xf32>
    %378 = arith.mulf %374, %377 : vector<8x128xf32>
    %379 = arith.mulf %368, %378 : vector<8x128xf32>
    %380 = arith.mulf %379, %365 : vector<8x128xf32>
    %381 = arith.subf %370, %380 : vector<8x128xf32>
    %cst_72 = arith.constant 1.000000e-30 : f32
    %382 = vector.broadcast %cst_72 : f32 to vector<8x128xf32>
    %383 = arith.maximumf %381, %382 : vector<8x128xf32>
    %384 = arith.mulf %373, %383 : vector<8x128xf32>
    %385 = math.log %384 : vector<8x128xf32>
    %386 = vector.broadcast %28 : f32 to vector<8x128xf32>
    %387 = arith.subf %385, %386 : vector<8x128xf32>
    %c1_73 = arith.constant 1 : index
    %c0_74 = arith.constant 0 : index
    %c0_75 = arith.constant 0 : index
    %388 = vector.load %arg3[%c1_73, %c0_74, %c0_75] : memref<2x8x128xf32, #tpu.memory_space<vmem>>, vector<1x8x128xf32>
    %389 = vector.shape_cast %388 : vector<1x8x128xf32> to vector<8x128xf32>
    %390 = vector.shape_cast %387 : vector<8x128xf32> to vector<1x8x128xf32>
    tpu.vector_store %arg3[%c1_73, %c0_74, %c0_75], %390 {strides = array<i32>} : memref<2x8x128xf32, #tpu.memory_space<vmem>>, vector<1x8x128xf32>,
    return
  }
  func.func @transform_0(%arg0: i32) -> i32 {
    %c0_i32 = arith.constant 0 : i32
    %c0_i32_0 = arith.constant 0 : i32
    return %c0_i32 : i32
  }
  func.func @transform_1(%arg0: i32) -> (i32, i32, i32) {
    %c0_i32 = arith.constant 0 : i32
    %c0_i32_0 = arith.constant 0 : i32
    %c0_i32_1 = arith.constant 0 : i32
    return %arg0, %c0_i32, %c0_i32_0 : i32, i32, i32
  }
  func.func @transform_2(%arg0: i32) -> (i32, i32, i32) {
    %c0_i32 = arith.constant 0 : i32
    %c0_i32_0 = arith.constant 0 : i32
    %c0_i32_1 = arith.constant 0 : i32
    return %arg0, %c0_i32, %c0_i32_0 : i32, i32, i32
  }
}

</mosaic_0001>

<bundles_post_ra>
// kernel: tpu_custom_call.1
= control target key start
LH: loop header
LB: loop body
LE: loop exit
PB: predicated region body
PF: predicated region fallthrough
CT: control target
= control target key end

     0   :  { %7 = vsyncpa [#allocation5], 0  ;;  %s1270_s0 = inlined_call_operand.hbm [shape: f32[33], index: 0, kind: input, shape index: {}]   ;;  %s1271_s1 = inlined_call_operand.hbm [shape: s32[6,8,128], index: 1, kind: input, shape index: {}]   ;;  %s1272_s2 = inlined_call_operand.hbm [shape: f32[6,8,128], index: 2, kind: output, shape index: {}]  }
   0x1   :  { %8 = vsyncpa [#allocation3], 0 }
   0x2   :  { %10 = vsyncpa [#allocation3 + $0x1], 0 }
   0x3   :  { %11 = vsyncpa [#allocation4], 0 }
   0x4   :  { %13 = vsyncpa [#allocation4 + $0x1], 0  ;;  %s830_s9 = smov 0   ;;  %s832_s10 = smov 0  }
   0x5   :  { %s834_s11 = smov 0   ;;  %s836_s12 = smov 0  }
   0x6 LB: > { %s851_s13 = sadd.s32 4294967295, %s808_s12   ;;  %s567_s14 = sadd.s32 4294967294, %s808_s12   ;;  %s808_s12 = sphi %s836_s12, %s1282_s12   ;;  %s804_s11 = sphi %s834_s11, %s1281_s11   ;;  %s800_s10 = sphi %s832_s10, %s1280_s10   ;;  %s796_s9 = sphi %s830_s9, %s1279_s9  }
   0x7   : > { %s855_s15 = sadd.s32 1, %s808_s12   ;;  %s47_s16 = sadd.s32 1, %s804_s11 }
   0x8   : > { %s44_s17 = ssub.s32 %s808_s12, %s855_s15  ;;  %p54_p0 = scmp.ne.s32.totalorder %s804_s11, %s800_s10 }
   0x9   : > { %p45_p1 = scmp.eq.s32.totalorder %s44_s17, 0  ;;  %p55_p2 = scmp.eq.s32.totalorder %s808_s12, 0 }
   0xa   : > { %p60_p3 = scmp.ne.s32.totalorder %s800_s10, %s796_s9  ;;  %p61_p4 = scmp.eq.s32.totalorder %s851_s13, 0 }
   0xb   : > { %s867_s18 = scalar_select %p45_p1, %s804_s11, %s47_s16  }
   0xc   : > { %p869_p5 = por %p55_p2, %p54_p0  ;;  %p875_p6 = por %p61_p4, %p60_p3 }
   0xd   : > { %p84_p7 = scmp.eq.s32.totalorder %s851_s13, 2  ;;  %p90_p8 = scmp.eq.s32.totalorder %s567_s14, 2 }
   0xe   : > { %p568_p9 = scmp.ge.s32.totalorder %s808_s12, 1  ;;  %p97_p10 = scmp.lt.s32.totalorder %s808_s12, 4 }
   0xf   : > { %p882_p11 = por %p84_p7, %p54_p0  ;;  %p886_p12 = por %p90_p8, %p60_p3 }
  0x10   : > { %p890_p13 = pnand %p568_p9, %p97_p10  ;;  %s109_s26 = sshll.u32 %s1270_s0, 4  ;;  %s110_s26 = int_to_ptr.hbm [resolvable:$true] %s109_s26 }
  0x11   : > { %p637_p0 = scmp.lt.s32.totalorder %s808_s12, 3  ;;  %s120_s27 = sand.u32 1, %s804_s11  }
  0x12   : > { %p624_p1 = pneg %p890_p13  ;;  %s571_s29 = sshll.u32 %s120_s27, 4 }
  0x13   : > { %p905_p3 = pnand %p637_p0, %p869_p5  ;;  %s810_s30 = smov [#allocation2]  }
  0x14   : > { %p625_p2 = pnand %p624_p1, %p61_p4  ;;  %s614_s3 = sshll.u32 %s808_s12, 4 }
  0x15   : > { %s124_s4 = scalar_lea.vmem [#allocation6], %s571_s29  ;;  %s129_s8 = scalar_lea.hbm %s1271_s1, %s614_s3 }
  0x16   : > { %627 = dma.hbm_to_smem (!%p625_p2), %s110_s26, 16, %s810_s30, [#allocation5]  }
  0x17   : > { %s132_s5 = sshll.u32 %s124_s4, 4  ;;  %s130_s14 = sshll.u32 %s129_s8, 4  ;;  %s133_s5 = int_to_ptr.vmem [resolvable:$true] %s132_s5  ;;  %s131_s14 = int_to_ptr.hbm [resolvable:$true] %s130_s14 }
  0x18   : > { %s121_s16 = scalar_lea.sflag [#allocation3], %s120_s27  ;;  %s708_s17 = sshra.s32 %s131_s14, 4  ;;  %s709_s17 = int_to_ptr.hbm [resolvable:$true] %s708_s17 }
  0x19   : > { %s710_s19 = scalar_lea.hbm %s709_s17, 16  ;;  %p712_p7 = pneg %p905_p3 }
  0x1a   : > { %p711_p5 = scmp.ne.s32.totalorder %s709_s17, %s710_s19  ;;  %s715_s26 = scalar_lea.hbm %s1271_s1, 48 }
  0x1b   : > { %p716_p10 = scmp.lt.s32.totalorder %s709_s17, %s1271_s1  ;;  %p717_p1 = scmp.lt.s32.totalorder %s715_s26, %s710_s19 }
  0x1c   : > { %p713_p8 = pnand %p712_p7, %p711_p5 }
  0x1d   : > { %p718_p0 = por %p717_p1, %p716_p10 }
  0x1e   : > { %p714_p9 = pneg %p713_p8 }
  0x20   : > { %p719_p2 = pnand %p718_p0, %p714_p9 }
  0x22   : > { %722 = shalt.err (!%p719_p2)
}
  0x23   : > { %s811_s27 = smov 128   ;;  %s812_s3 = smov 8  }
  0x24   : > { %631 = dma.hbm_to_vmem [thread:$0]  (!%p905_p3), %s131_s14, 256, %s133_s5, %s121_s16, %s811_s27, %s811_s27, %s812_s3  }
  0x25   : > { %144 = sbr.rel (%p890_p13) target bundleno = 148 (0x94), region = 28 }
  0x2a   : > { %783 = dma.done.wait (%p61_p4), [#allocation5], 16  }
  0x2b   : > { %785 = vsyncadd (%p61_p4), [#allocation5], 4294967280  ;;  %s930_s4 = sand.u32 1, %s800_s10  }
  0x2c   : > { %s576_s6 = sshll.u32 %s930_s4, 4  ;;  %s152_s7 = scalar_lea.sflag [#allocation3], %s930_s4 }
  0x2d   : > { %s155_s28 = scalar_lea.vmem [#allocation6], %s576_s6 }
  0x2e   : > { %787 = dma.done.wait (%p875_p6), %s152_s7, 256  }
  0x2f   : > { %789 = vsyncadd (%p875_p6), %s152_s7, 4294967040 }
  0x30   : > { %161 = sfence }
  0x31   : > { %s578_s23 = sld [smem:[#allocation2 + $0x1]]  ;;  %v940_v0 = vld [vmem:[%s155_s28] sm:$0xff]  ;;  %v943_v2 = vld [vmem:[%s155_s28 + $0x8] sm:$0xff] }
  0x32   : > { %s579_s5 = sld [smem:[#allocation2 + $0x2]]  ;;  %v210_v1 = vand.u32 3, %v940_v0  ;;  %v353_v4 = vand.u32 3, %v943_v2  ;;  %v220_v9 = vshra.s32 %v940_v0, 2  ;;  %v231_v23 = vshra.s32 %v940_v0, 4 }
  0x33   : > { %s580_s8 = sld [smem:[#allocation2 + $0x3]]  ;;  %v360_v24 = vshra.s32 %v943_v2, 2  ;;  %v242_v43 = vshra.s32 %v940_v0, 6  ;;  %v368_v51 = vshra.s32 %v943_v2, 4 }
  0x34   : > { %vm211_vm0 = vcmp.eq.s32.totalorder %v210_v1, 1  ;;  %vm214_vm1 = vcmp.eq.s32.totalorder %v210_v1, 2  ;;  %s590_s14 = sld [smem:[#allocation2 + $0x10]]  ;;  %vm217_vm2 = vcmp.eq.s32.totalorder %v210_v1, 3  ;;  %vm354_vm3 = vcmp.eq.s32.totalorder %v353_v4, 1 }
  0x35   : > { %s947_s20 = sld [smem:[#allocation2 + $0x5]]  ;;  %vm356_vm4 = vcmp.eq.s32.totalorder %v353_v4, 2  ;;  %v221_v12 = vand.u32 3, %v220_v9  ;;  %vm358_vm6 = vcmp.eq.s32.totalorder %v353_v4, 3  ;;  %v232_v29 = vand.u32 3, %v231_v23 }
  0x36   : > { %s951_s16 = sld [smem:[#allocation2 + $0x6]]  ;;  %v361_v31 = vand.u32 3, %v360_v24  ;;  %v1026_v52 = vand.u32 3, %v242_v43  ;;  %v1040_v60 = vand.u32 3, %v368_v51 }
  0x37   : > { %v212_v3 = vstv %s578_s23  ;;  %s955_s17 = sld [smem:[#allocation2 + $0x7]]  ;;  %vm222_vm7 = vcmp.eq.s32.totalorder %v221_v12, 1  ;;  %vm225_vm8 = vcmp.eq.s32.totalorder %v221_v12, 2  ;;  %vm228_vm10 = vcmp.eq.s32.totalorder %v221_v12, 3 }
  0x38   : > { %v213_v5 = vsel %vm211_vm0, %v212_v3, 0.0  ;;  %v215_v6 = vstv %s579_s5  ;;  %v355_v11 = vsel %vm354_vm3, %v212_v3, 0.0  ;;  %s959_s19 = sld [smem:[#allocation2 + $0x14]]  ;;  %vm233_vm11 = vcmp.eq.s32.totalorder %v232_v29, 1 }
  0x39   : > { %v216_v7 = vsel %vm214_vm1, %v215_v6, %v213_v5  ;;  %v218_v8 = vstv %s580_s8  ;;  %v357_v14 = vsel %vm356_vm4, %v215_v6, %v355_v11  ;;  %s964_s24 = sld [smem:[#allocation2 + $0x15]]  ;;  %vm362_vm12 = vcmp.eq.s32.totalorder %v361_v31, 1 }
  0x3a   : > { %v949_v10 = vsel %vm217_vm2, %v218_v8, %v216_v7  ;;  %v253_v13 = vstv %s590_s14  ;;  %v957_v17 = vsel %vm358_vm6, %v218_v8, %v357_v14  ;;  %s966_s25 = sld [smem:[#allocation2 + $0x11]]  ;;  %vm236_vm14 = vcmp.eq.s32.totalorder %v232_v29, 2 }
  0x3b   : > { %vm285_vm5 = vcmp.eq.f32.partialorder %v949_v10, 0.0  ;;  %v254_v15 = vmul.f32 %v253_v13, %v949_v10  ;;  %v223_v18 = vstv %s947_s20  ;;  %v384_v20 = vmul.f32 %v957_v17, %v253_v13  ;;  %s972_s26 = sld [smem:[#allocation2 + $0x9]] }
  0x3c   : > { %v224_v21 = vsel %vm222_vm7, %v223_v18, 0.0  ;;  %v226_v22 = vstv %s951_s16  ;;  %vm400_vm9 = vcmp.eq.f32.partialorder %v957_v17, 0.0  ;;  %s977_s29 = sld [smem:[#allocation2 + $0xa]]  ;;  %vm364_vm15 = vcmp.eq.s32.totalorder %v361_v31, 2 }
  0x3d   : > { %v286_v16 = vsel %vm285_vm5, 1.0, %v254_v15  ;;  %v227_v25 = vsel %vm225_vm8, %v226_v22, %v224_v21  ;;  %v229_v26 = vstv %s955_s17  ;;  %v401_v27 = vsel %vm400_vm9, 1.0, %v384_v20  ;;  %s980_s30 = sld [smem:[#allocation2 + $0x18]] }
  0x3e   : > { %v962_v19 = vmax.f32 %v286_v16, 1e-30  ;;  %v261_v30 = vstv %s959_s19  ;;  %v982_v32 = vsel %vm228_vm10, %v229_v26, %v227_v25  ;;  %v986_v35 = vmax.f32 %v401_v27, 1e-30  ;;  %s989_s27 = sld [smem:[#allocation2 + $0xb]] }
  0x3f   : > { %v263_v33 = vstv %s964_s24  ;;  %v262_v37 = vmul.f32 %v261_v30, %v949_v10  ;;  %s994_s3 = sld [smem:[#allocation2 + $0xd]]  ;;  %vm287_vm13 = vcmp.eq.f32.partialorder %v982_v32, 0.0  ;;  %v363_v48 = vsel %vm362_vm12, %v223_v18, 0.0 }
  0x40   : > { %677 = vrcp.f32 %v962_v19  ;;  %v255_v36 = vstv %s966_s25  ;;  %v264_v40 = vmul.f32 %v263_v33, %v982_v32  ;;  %s1003_s7 = sld [smem:[#allocation2 + $0x12]]  ;;  %vm239_vm0 = vcmp.eq.s32.totalorder %v232_v29, 3 }
  0x41   : > { %v234_v39 = vstv %s972_s26  ;;  %v997_v41 = vmul.f32 %v255_v36, %v982_v32  ;;  %679 = vrcp.f32 %v986_v35  ;;  %s1006_s28 = sld [smem:[#allocation2 + $0xe]]  ;;  %vm366_vm1 = vcmp.eq.s32.totalorder %v361_v31, 3 }
  0x42   : > { %s1011_s23 = sld [smem:[#allocation2 + $0x19]]  ;;  %v235_v45 = vsel %vm233_vm11, %v234_v39, 0.0  ;;  %v237_v46 = vstv %s977_s29  ;;  %v288_v47 = vsel %vm287_vm13, 1.0, %v264_v40  ;;  %v365_v57 = vsel %vm364_vm15, %v226_v22, %v363_v48 }
  0x43   : > { %s1018_s5 = sld [smem:[#allocation2 + $0x1a]]  ;;  %v269_v49 = vstv %s980_s30  ;;  %v238_v54 = vsel %vm236_vm14, %v237_v46, %v235_v45  ;;  %v1047_v63 = vsel %vm366_vm1, %v229_v26, %v365_v57  ;;  %vm244_vm2 = vcmp.eq.s32.totalorder %v1026_v52, 1  ;;  %s177_s30 = scalar_lea.vmem [#allocation7], %s576_s6 }
  0x44   : > { %s1024_s8 = sld [smem:[#allocation2 + $0x1c]]  ;;  %v240_v55 = vstv %s989_s27  ;;  %v270_v58 = vmul.f32 %v269_v49, %v949_v10  ;;  %vm247_vm3 = vcmp.eq.s32.totalorder %v1026_v52, 2  ;;  %vm250_vm4 = vcmp.eq.s32.totalorder %v1026_v52, 3  ;;  %s615_s27 = sshll.u32 %s851_s13, 4 }
  0x45   : > { %s1028_s14 = sld [smem:[#allocation2 + $0x16]]  ;;  %v1044_v61 = vsel %vm239_vm0, %v240_v55, %v238_v54  ;;  %v245_v1 = vstv %s994_s3  ;;  %v388_v4 = vmul.f32 %v957_v17, %v261_v30  ;;  %vm402_vm5 = vcmp.eq.f32.partialorder %v1047_v63, 0.0 }
  0x46   : > { %v678_v28 = vpop.eup %677  ;;  %v257_v62 = vstv %s1003_s7  ;;  %s1050_s20 = sld [smem:[#allocation2 + $0xf]]  ;;  %vm370_vm6 = vcmp.eq.s32.totalorder %v1040_v60, 1  ;;  %v389_v8 = vmul.f32 %v1047_v63, %v263_v33  ;;  %v1075_v12 = vmul.f32 %v1047_v63, %v255_v36 }
  0x47   : > { %v295_v34 = vmul.f32 %v678_v28, %v962_v19  ;;  %v680_v53 = vpop.eup %679  ;;  %v1065_v6 = vmul.f32 %v257_v62, %v1044_v61  ;;  %s1070_s16 = sld [smem:[#allocation2 + $0x1d]]  ;;  %v246_v14 = vsel %vm244_vm2, %v245_v1, 0.0  ;;  %v248_v15 = vstv %s1006_s28  ;;  %s478_s28 = scalar_lea.hbm %s1272_s2, %s615_s27 }
  0x48   : > { %v410_v0 = vmul.f32 %v680_v53, %v986_v35  ;;  %v271_v7 = vstv %s1011_s23  ;;  %s1079_s17 = sld [smem:[#allocation2 + $0x13]]  ;;  %vm289_vm7 = vcmp.eq.f32.partialorder %v1044_v61, 0.0  ;;  %v371_v21 = vsel %vm370_vm6, %v234_v39, 0.0  ;;  %s479_s23 = sshll.u32 %s177_s30, 4  ;;  %s480_s23 = int_to_ptr.vmem [resolvable:$true] %s479_s23 }
  0x49   : > { %v296_v38 = vsub.f32 2.0, %v295_v34  ;;  %v273_v9 = vstv %s1018_s5  ;;  %s1088_s19 = sld [smem:[#allocation2 + $0x17]]  ;;  %v272_v18 = vmul.f32 %v271_v7, %v982_v32  ;;  %vm372_vm8 = vcmp.eq.s32.totalorder %v1040_v60, 2  ;;  %s481_s5 = sshll.u32 %s478_s28, 4  ;;  %s482_s5 = int_to_ptr.hbm [resolvable:$true] %s481_s5 }
  0x4a   : > { %v411_v5 = vsub.f32 2.0, %v410_v0  ;;  %v277_v11 = vstv %s1024_s8  ;;  %v274_v24 = vmul.f32 %v273_v9, %v1044_v61  ;;  %v403_v26 = vsel %vm402_vm5, 1.0, %v389_v8  ;;  %s1109_s24 = sld [smem:[#allocation2 + $0x1b]]  ;;  %s467_s8 = scalar_lea.sflag [#allocation4], %s930_s4 }
  0x4b   : > { %v1000_v42 = vmul.f32 %v678_v28, %v296_v38  ;;  %v265_v16 = vstv %s1028_s14  ;;  %v278_v25 = vmul.f32 %v277_v11, %v949_v10  ;;  %v249_v30 = vsel %vm247_vm3, %v248_v15, %v246_v14  ;;  %s1124_s25 = sld [smem:[#allocation2 + $0x1e]]  ;;  %s752_s14 = sshra.s32 %s482_s5, 4  ;;  %s753_s14 = int_to_ptr.hbm [resolvable:$true] %s752_s14 }
  0x4c   : > { %v1077_v13 = vmul.f32 %v680_v53, %v411_v5  ;;  %v266_v27 = vmul.f32 %v265_v16, %v1044_v61  ;;  %v251_v31 = vstv %s1050_s20  ;;  %vm374_vm9 = vcmp.eq.s32.totalorder %v1040_v60, 3  ;;  %s1128_s26 = sld [smem:[#allocation2 + $0x1f]]  ;;  %s754_s6 = scalar_lea.hbm %s753_s14, 16 }
  0x4d   : > { %v1009_v44 = vmul.f32 %v1000_v42, %v262_v37  ;;  %v1058_v3 = vmul.f32 %v1000_v42, %v270_v58  ;;  %v376_v33 = vshra.s32 %v943_v2, 6  ;;  %v290_v39 = vsel %vm289_vm7, 1.0, %v274_v24  ;;  %s1231_s29 = sld [smem:[#allocation2 + $0x20]]  ;;  %p755_p4 = scmp.ne.s32.totalorder %s753_s14, %s754_s6 }
  0x4e   : > { %v1098_v22 = vmul.f32 %v1077_v13, %v388_v4  ;;  %v312_v40 = vmul.f32 %v1000_v42, %v278_v25  ;;  %v373_v2 = vsel %vm372_vm8, %v237_v46, %v371_v21  ;;  %v392_v43 = vmul.f32 %v957_v17, %v269_v49  ;;  %p759_p3 = scmp.lt.s32.totalorder %s753_s14, %s1272_s2 }
  0x4f   : > { %v299_v50 = vmul.f32 %v1009_v44, %v997_v41  ;;  %v306_v20 = vmul.f32 %v1058_v3, %v997_v41  ;;  %v301_v28 = vmul.f32 %v1009_v44, %v1065_v6  ;;  %v308_v36 = vmul.f32 %v1058_v3, %v1065_v6  ;;  %p756_p6 = pnand %p755_p4, %p882_p11 }
  0x50   : > { %v414_v10 = vmul.f32 %v1098_v22, %v1075_v12  ;;  %v279_v45 = vstv %s1070_s16  ;;  %v252_v51 = vsel %vm250_vm4, %v251_v31, %v249_v30  ;;  %v259_v42 = vstv %s1079_s17  ;;  %s758_s16 = scalar_lea.hbm %s1272_s2, 48 }
  0x51   : > { %v300_v56 = vsub.f32 %v288_v47, %v299_v50  ;;  %v307_v34 = vsub.f32 %v272_v18, %v306_v20  ;;  %v302_v47 = vsub.f32 %v266_v27, %v301_v28  ;;  %v377_v53 = vand.u32 3, %v376_v33  ;;  %p757_p13 = pneg %p756_p6  ;;  %p760_p5 = scmp.lt.s32.totalorder %s758_s16, %s754_s6 }
  0x52   : > { %v415_v38 = vsub.f32 %v403_v26, %v414_v10  ;;  %v267_v46 = vstv %s1088_s19  ;;  %v309_v54 = vsub.f32 %v290_v39, %v308_v36  ;;  %v1153_v49 = vsel %vm374_vm9, %v240_v55, %v373_v2 }
  0x53   : > { %v1038_v59 = vmax.f32 %v300_v56, 1e-30  ;;  %v280_v57 = vmul.f32 %v279_v45, %v982_v32  ;;  %v313_v52 = vmul.f32 %v312_v40, %v997_v41  ;;  %v275_v58 = vstv %s1109_s24  ;;  %p761_p7 = por %p760_p5, %p759_p3 }
  0x54   : > { %v1141_v50 = vmax.f32 %v415_v38, 1e-30  ;;  %v1162_v4 = vmul.f32 %v1077_v13, %v392_v43  ;;  %v260_v60 = vmul.f32 %v259_v42, %v252_v51  ;;  %v268_v55 = vmul.f32 %v267_v46, %v252_v51 }
  0x55   : > { %681 = vrcp.f32 %v1038_v59  ;;  %vm378_vm10 = vcmp.eq.s32.totalorder %v377_v53, 1  ;;  %v1171_v32 = vmul.f32 %v1153_v49, %v257_v62  ;;  %v281_v41 = vstv %s1124_s25  ;;  %p762_p8 = pnand %p761_p7, %p757_p13 }
  0x56   : > { %683 = vrcp.f32 %v1141_v50  ;;  %v390_v8 = vmul.f32 %v1153_v49, %v265_v16  ;;  %v393_v14 = vmul.f32 %v1047_v63, %v271_v7  ;;  %v276_v18 = vmul.f32 %v275_v58, %v252_v51 }
  0x57   : > { %v283_v20 = vstv %s1128_s26  ;;  %v314_v21 = vsub.f32 %v280_v57, %v313_v52  ;;  %v379_v62 = vsel %vm378_vm10, %v245_v1, 0.0  ;;  %vm380_vm11 = vcmp.eq.s32.totalorder %v377_v53, 2 }
  0x58   : > { %v421_v25 = vmul.f32 %v1162_v4, %v1075_v12  ;;  %v282_v7 = vmul.f32 %v281_v41, %v1044_v61  ;;  %v303_v26 = vmul.f32 %v1009_v44, %v260_v60  ;;  %v396_v27 = vmul.f32 %v957_v17, %v277_v11 }
  0x59   : > { %vm404_vm12 = vcmp.eq.f32.partialorder %v1153_v49, 0.0  ;;  %v416_v1 = vmul.f32 %v1098_v22, %v1171_v32  ;;  %v381_v61 = vsel %vm380_vm11, %v248_v15, %v379_v62  ;;  %vm382_vm13 = vcmp.eq.s32.totalorder %v377_v53, 3 }
  0x5a   : > { %v310_v44 = vmul.f32 %v1058_v3, %v260_v60  ;;  %v422_v17 = vsub.f32 %v393_v14, %v421_v25  ;;  %v423_v11 = vmul.f32 %v1162_v4, %v1171_v32  ;;  %vm291_vm14 = vcmp.eq.f32.partialorder %v252_v51, 0.0 }
  0x5b   : > { %v682_v23 = vpop.eup %681  ;;  %v304_v33 = vsub.f32 %v268_v55, %v303_v26  ;;  %v427_v36 = vmul.f32 %v1077_v13, %v396_v27  ;;  %v317_v39 = vmul.f32 %v312_v40, %v260_v60  ;;  %v383_v2 = vsel %vm382_vm13, %v251_v31, %v381_v61 }
  0x5c   : > { %v322_v29 = vmul.f32 %v682_v23, %v1038_v59  ;;  %v684_v16 = vpop.eup %683  ;;  %v397_v52 = vmul.f32 %v1047_v63, %v279_v45  ;;  %v399_v25 = vmul.f32 %v383_v2, %v283_v20  ;;  %v395_v26 = vmul.f32 %v383_v2, %v275_v58 }
  0x5d   : > { %v437_v28 = vmul.f32 %v684_v16, %v1141_v50  ;;  %v428_v13 = vmul.f32 %v427_v36, %v1075_v12  ;;  %v391_v12 = vmul.f32 %v383_v2, %v267_v46  ;;  %vm406_vm15 = vcmp.eq.f32.partialorder %v383_v2, 0.0 }
  0x5e   : > { %v323_v37 = vsub.f32 2.0, %v322_v29  ;;  %v315_v29 = vmul.f32 %v312_v40, %v1065_v6  ;;  %v417_v6 = vsub.f32 %v390_v8, %v416_v1  ;;  %v407_v1 = vsel %vm406_vm15, 1.0, %v399_v25 }
  0x5f   : > { %v438_v30 = vsub.f32 2.0, %v437_v28  ;;  %v429_v14 = vsub.f32 %v397_v52, %v428_v13 }
  0x60   : > { %v324_v48 = vmul.f32 %v682_v23, %v323_v37  ;;  %v394_v23 = vmul.f32 %v1153_v49, %v273_v9  ;;  %v284_v9 = vmul.f32 %v283_v20, %v252_v51  ;;  %v316_v38 = vsub.f32 %v282_v7, %v315_v29 }
  0x61   : > { %v439_v37 = vmul.f32 %v684_v16, %v438_v30  ;;  %v430_v16 = vmul.f32 %v427_v36, %v1171_v32 }
  0x62   : > { %v325_v56 = vmul.f32 %v324_v48, %v307_v34  ;;  %v330_v10 = vmul.f32 %v324_v48, %v314_v21  ;;  %v405_v34 = vsel %vm404_vm12, 1.0, %v394_v23  ;;  %v292_v43 = vsel %vm291_vm14, 1.0, %v284_v9 }
  0x63   : > { %v311_v48 = vsub.f32 %v276_v18, %v310_v44  ;;  %v424_v53 = vsub.f32 %v405_v34, %v423_v11  ;;  %v320_v18 = vmul.f32 %v1038_v59, %v962_v19  ;;  %v398_v23 = vmul.f32 %v1153_v49, %v281_v41 }
  0x64   : > { %v326_v0 = vmul.f32 %v325_v56, %v302_v47  ;;  %v331_v15 = vmul.f32 %v330_v10, %v302_v47  ;;  %v328_v57 = vmul.f32 %v325_v56, %v304_v33  ;;  %v318_v47 = vsub.f32 %v292_v43, %v317_v39 }
  0x65   : > { %v333_v60 = vmul.f32 %v330_v10, %v304_v33  ;;  %v445_v7 = vmul.f32 %v439_v37, %v429_v14  ;;  %v431_v28 = vsub.f32 %v398_v23, %v430_v16  ;;  %v435_v11 = vmul.f32 %v1141_v50, %v986_v35 }
  0x66   : > { %v327_v5 = vsub.f32 %v309_v54, %v326_v0  ;;  %v440_v54 = vmul.f32 %v439_v37, %v422_v17  ;;  %v387_v0 = vmul.f32 %v383_v2, %v259_v42  ;;  %v332_v31 = vsub.f32 %v316_v38, %v331_v15 }
  0x67   : > { %v329_v8 = vsub.f32 %v311_v48, %v328_v57  ;;  %v334_v45 = vsub.f32 %v318_v47, %v333_v60  ;;  %v446_v49 = vmul.f32 %v445_v7, %v417_v6 }
  0x68   : > { %v1184_v24 = vmax.f32 %v327_v5, 1e-30  ;;  %v441_v40 = vmul.f32 %v440_v54, %v417_v6  ;;  %v418_v42 = vmul.f32 %v1098_v22, %v387_v0  ;;  %v425_v46 = vmul.f32 %v1162_v4, %v387_v0 }
  0x69   : > { %v432_v9 = vmul.f32 %v427_v36, %v387_v0  ;;  %v348_v36 = vstv %s1231_s29 }
  0x6a   : > { %685 = vrcp.f32 %v1184_v24  ;;  %v442_v5 = vsub.f32 %v424_v53, %v441_v40  ;;  %v336_v19 = vmul.f32 %v1184_v24, %v320_v18  ;;  %v419_v27 = vsub.f32 %v391_v12, %v418_v42 }
  0x6b   : > { %v426_v20 = vsub.f32 %v395_v26, %v425_v46  ;;  %v433_v10 = vsub.f32 %v407_v1, %v432_v9 }
  0x6c   : > { %v450_v63 = vmax.f32 %v442_v5, 1e-30  ;;  %v443_v29 = vmul.f32 %v440_v54, %v419_v27  ;;  %v448_v61 = vmul.f32 %v445_v7, %v419_v27 }
  0x6e   : > { %687 = vrcp.f32 %v450_v63  ;;  %v444_v4 = vsub.f32 %v426_v20, %v443_v29  ;;  %v449_v30 = vsub.f32 %v433_v10, %v448_v61  ;;  %v451_v38 = vmul.f32 %v450_v63, %v435_v11 }
  0x70   : > { %v686_v3 = vpop.eup %685 }
  0x71   : > { %v338_v51 = vmul.f32 %v686_v3, %v1184_v24  ;;  %v447_v24 = vsub.f32 %v431_v28, %v446_v49 }
  0x73   : > { %v339_v55 = vsub.f32 2.0, %v338_v51 }
  0x74   : > { %v688_v41 = vpop.eup %687 }
  0x75   : > { %v340_v56 = vmul.f32 %v686_v3, %v339_v55  ;;  %v453_v58 = vmul.f32 %v688_v41, %v450_v63 }
  0x77   : > { %v341_v21 = vmul.f32 %v340_v56, %v332_v31  ;;  %v454_v44 = vsub.f32 2.0, %v453_v58 }
  0x79   : > { %v342_v62 = vmul.f32 %v341_v21, %v329_v8  ;;  %v455_v17 = vmul.f32 %v688_v41, %v454_v44 }
  0x7b   : > { %v343_v59 = vsub.f32 %v334_v45, %v342_v62  ;;  %v456_v33 = vmul.f32 %v455_v17, %v447_v24 }
  0x7d   : > { %v344_v22 = vmax.f32 %v343_v59, 1e-30  ;;  %v457_v6 = vmul.f32 %v456_v33, %v444_v4 }
  0x7f   : > { %v345_v32 = vmul.f32 %v344_v22, %v336_v19  ;;  %v458_v39 = vsub.f32 %v449_v30, %v457_v6 }
  0x81   : > { %689 = vlog2.f32 %v345_v32  ;;  %v459_v2 = vmax.f32 %v458_v39, 1e-30 }
  0x83   : > { %v460_v3 = vmul.f32 %v459_v2, %v451_v38 }
  0x85   : > { %691 = vlog2.f32 %v460_v3 }
  0x87   : > { %v690_v34 = vpop.eup %689 }
  0x88   : > { %v347_v37 = vmul.f32 0.6931472, %v690_v34 }
  0x8a   : > { %v349_v15 = vsub.f32 %v347_v37, %v348_v36 }
  0x8b   : > { %v692_v35 = vpop.eup %691 }
  0x8c   : > { %350 = vst [vmem:[%s177_s30] sm:$0xff] %v349_v15  ;;  %v462_v50 = vmul.f32 0.6931472, %v692_v35 }
  0x8e   : > { %v463_v43 = vsub.f32 %v462_v50, %v348_v36 }
  0x90   : > { %608 = vst [vmem:[%s177_s30 + $0x8] sm:$0xff] %v463_v43 }
  0x91   : > { %765 = shalt.err (!%p762_p8)
}
  0x92   : > { %s813_s4 = smov 128   ;;  %s814_s24 = smov 8  }
  0x93   : > { %622 = dma.vmem_to_hbm [thread:$0]  (%p882_p11), %s480_s23, 256, %s482_s5, %s467_s8, %s813_s4, %s813_s4, %s814_s24  }
  0x94 PF: > { %p639_p9 = scmp.ge.s32.totalorder %s808_s12, 2  ;;  %s496_s25 = sand.u32 1, %s796_s9  }
  0x95   : > { %s497_s26 = scalar_lea.sflag [#allocation4], %s496_s25 }
  0x96   : > { %p633_p10 = pnand %p639_p9, %p886_p12 }
  0x98   : > { %p634_p1 = pneg %p633_p10 }
  0x9a   : > { %791 = dma.done.wait (%p634_p1), %s497_s26, 256  }
  0x9b   : > { %793 = vsyncadd (%p634_p1), %s497_s26, 4294967040  ;;  %p16_p0 = scmp.ge.s32.totalorder %s855_s15, 5   ;;  %s1279_s9 = smov %s800_s10 }
  0x9c   : > { %s1280_s10 = smov %s804_s11  ;;  %s1281_s11 = smov %s867_s18 }
  0x9d   : > { %s1282_s12 = smov %s855_s15  ;;  %18 = sbr.rel (!%p16_p0) target bundleno = 6 (0x6), region = 80 }
  0xa2   :  { %503 = vsyncpa [#allocation3], 1 }
  0xa3   :  { %505 = vsyncpa [#allocation3 + $0x1], 1 }
  0xa4   :  { %506 = vsyncpa [#allocation4], 1 }
  0xa5   :  { %508 = vsyncpa [#allocation4 + $0x1], 1 }
  0xa6   :  { %509 = vsyncpa [#allocation5], 1 }
  0xa7   :  { %511 = vsyncpa [#allocation5 + $0x1], 1 }

</bundles_post_ra>
